<compile_context>
chip_gen: v5e
topology: v5e:2x2
jax: 0.10.0
libtpu: 0.0.40
codegen_flags: <defaults>
</compile_context>

<pallas_src>
import functools

import numpy as np
import jax
import jax.numpy as jnp
from jax import lax
from jax.experimental import pallas as pl
from jax.experimental.pallas import tpu as pltpu

_VMEM_BUDGET = 20 * 1024 * 1024   # working-set target used to cap the row tile
_VMEM_LIMIT = 28 * 1024 * 1024    # explicit scoped-VMEM limit (v7x-safe)


def _row_cap(c, itemsize):
    # VMEM bytes per row: double-buffered logits+targets plus ~6 live f32
    # temporaries per class element plus a few per-row f32 scalars.
    per_row = 2 * (c * itemsize + 4) + 6 * c * 4 + 32
    return max(128, _VMEM_BUDGET // per_row)


def _focal_kernel(x_ref, t_ref, a_ref, out_ref, *, gamma, gamma_int, n_rows,
                  rows_per_block, class_axis, has_alpha, needs_mask):
    """Shape-generic focal-loss block.

    `class_axis` of the block is the class dim; all other block dims enumerate
    rows.  Every intermediate stays strictly per-row until the final mask, so
    garbage in out-of-bounds rows of a partial block cannot leak into valid
    rows -- do NOT insert cross-row ops above the mask.
    """
    j = pl.program_id(1)

    x = x_ref[...].astype(jnp.float32)
    t = t_ref[...].astype(jnp.int32)          # size-1 along class_axis
    ca = class_axis % x.ndim

    # log-softmax over the class axis (per row).
    m = jnp.max(x, axis=ca, keepdims=True)
    z = x - m
    lse = jnp.log(jnp.sum(jnp.exp(z), axis=ca, keepdims=True))

    # One-hot gather of the target class (C is small and VMEM-resident).
    # NOTE: an out-of-range target yields an all-false one-hot -> logpt = -lse
    # (PyTorch's gather would raise instead).
    cls = lax.broadcasted_iota(jnp.int32, x.shape, ca)
    onehot = cls == t
    z_t = jnp.sum(jnp.where(onehot, z, 0.0), axis=ca, keepdims=True)
    logpt = z_t - lse
    pt = jnp.exp(logpt)

    if has_alpha:
        a = a_ref[...].astype(jnp.float32)    # broadcastable against x
        at = jnp.sum(jnp.where(onehot, a, 0.0), axis=ca, keepdims=True)
        logpt = logpt * at

    if gamma_int == 0:
        loss = -logpt
    elif gamma_int is not None:               # integer gamma -> plain multiplies
        omp = 1.0 - pt
        focal = omp
        for _ in range(gamma_int - 1):
            focal = focal * omp
        loss = -focal * logpt
    else:                                     # fractional gamma -> clamp then pow
        omp = jnp.maximum(1.0 - pt, 0.0)      # pt can round slightly above 1
        loss = -(omp ** gamma) * logpt

    if needs_mask:
        # Mask rows past the true extent (only the final partial block).  This
        # is a select, so NaN/Inf garbage in dead rows cannot propagate.
        ridx = jnp.zeros(loss.shape, jnp.int32)
        mult = 1
        for d in reversed([d for d in range(loss.ndim) if d != ca]):
            ridx = ridx + lax.broadcasted_iota(jnp.int32, loss.shape, d) * mult
            mult *= loss.shape[d]
        loss = jnp.where(j * rows_per_block + ridx < n_rows, loss, 0.0)

    # One partial sum per grid block, replicated into this block's private tile.
    out_ref[...] = jnp.zeros((8, 128), jnp.float32) + jnp.sum(loss)


def focal_loss(logits, target, gamma=0.0, alpha=None, size_average=True,
               tm=32768):
    """Focal loss mean; logits float (rows, C) or (N, C, H, W), integer targets."""
    if not size_average:
        # TODO(synk): size_average=False returns the per-row loss vector; only the mean path is kernelized.
        raise NotImplementedError("only size_average=True is implemented")

    x = jnp.asarray(logits)
    t = jnp.asarray(target)
    if t.dtype != jnp.int32:
        t = t.astype(jnp.int32)   # no-op if already int32

    if x.ndim > 2:
        n, c = int(x.shape[0]), int(x.shape[1])
        hw = int(np.prod(x.shape[2:]))
        class_axis = 0
    elif x.ndim == 2:
        n, c = 1, int(x.shape[1])
        hw = int(x.shape[0])
        class_axis = 1
    else:
        raise ValueError("logits must be at least 2-D")

    # alpha handling (mirrors FocalLoss.__init__)
    if alpha is None:
        a_flat = jnp.ones((c,), jnp.float32)
        has_alpha = False
    elif isinstance(alpha, (float, int)) and not isinstance(alpha, bool):
        assert c == 2, "scalar alpha implies binary classification"
        a_flat = jnp.array([float(alpha), 1.0 - float(alpha)], jnp.float32)
        has_alpha = True
    else:
        a_flat = jnp.asarray(alpha, jnp.float32).reshape(c)
        has_alpha = True

    itemsize = jnp.dtype(x.dtype).itemsize
    cap_rows = _row_cap(c, itemsize)
    tm_req = max(1, int(tm))

    if class_axis == 0 and hw % 128 == 0 and cap_rows >= 8 * 128:
        # ---- main path: (N, C, G, 128), classes across whole vregs ----
        G = hw // 128
        xk = x.reshape(n, c, G, 128)                 # free, contiguous
        tk = t.reshape(n, 1, G, 128)
        ak = a_flat.reshape(c, 1, 1)
        g_tile = min(G, max(1, tm_req // 128), max(8, cap_rows // 128))
        if n == 1:
            g_tile = min(g_tile, (G + 1) // 2)       # give both TensorCores work
        if g_tile >= G:
            g_tile = G
        else:
            g_tile = max(8, (g_tile // 8) * 8)
            if g_tile >= G:
                g_tile = G
        jb = (G + g_tile - 1) // g_tile
        rows_per_block = g_tile * 128
        in_specs = [
            pl.BlockSpec((None, c, g_tile, 128), lambda i, j: (i, 0, j, 0)),
            pl.BlockSpec((None, 1, g_tile, 128), lambda i, j: (i, 0, j, 0)),
            pl.BlockSpec((c, 1, 1), lambda i, j: (0, 0, 0)),
        ]
        n_grid = n
    elif class_axis == 0:
        # ---- fallback: (N, C, HW) classes on sublanes, rows on lanes ----
        xk = x.reshape(n, c, hw)                     # free reshape, no transpose
        tk = t.reshape(n, 1, hw)
        ak = a_flat.reshape(c, 1)
        tm_eff = min(max(128, (tm_req // 128) * 128),
                     max(128, (cap_rows // 128) * 128))
        if n == 1:
            half = ((hw + 1) // 2 + 127) // 128 * 128
            tm_eff = min(tm_eff, max(128, half))     # split so both TCs get work
        if hw <= tm_eff:
            tm_eff = hw                              # full-extent block (legal)
        jb = (hw + tm_eff - 1) // tm_eff
        rows_per_block = tm_eff
        in_specs = [
            pl.BlockSpec((None, c, tm_eff), lambda i, j: (i, 0, j)),
            pl.BlockSpec((None, 1, tm_eff), lambda i, j: (i, 0, j)),
            pl.BlockSpec((c, 1), lambda i, j: (0, 0)),
        ]
        n_grid = n
    else:
        # ---- 2-D (rows, C): consumed directly, no wrapper transpose ----
        R = hw
        xk = x[None]                                 # (1, R, C), free
        tk = t.reshape(R, 1)[None]                   # (1, R, 1)
        ak = a_flat.reshape(1, c)
        tm_rows = min(max(8, (tm_req // 8) * 8), max(8, (cap_rows // 8) * 8))
        half = ((R + 1) // 2 + 7) // 8 * 8
        tm_rows = min(tm_rows, max(8, half))         # n_grid==1: split over j
        if R <= tm_rows:
            tm_rows = R
        jb = (R + tm_rows - 1) // tm_rows
        rows_per_block = tm_rows
        in_specs = [
            pl.BlockSpec((None, tm_rows, c), lambda i, j: (i, j, 0)),
            pl.BlockSpec((None, tm_rows, 1), lambda i, j: (i, j, 0)),
            pl.BlockSpec((1, c), lambda i, j: (0, 0)),
        ]
        n_grid = 1

    needs_mask = (hw % rows_per_block) != 0

    gf = float(gamma)
    gamma_int = int(gf) if (gf.is_integer() and 0.0 <= gf <= 8.0) else None

    kernel = functools.partial(
        _focal_kernel, gamma=gf, gamma_int=gamma_int, n_rows=hw,
        rows_per_block=rows_per_block, class_axis=class_axis,
        has_alpha=has_alpha, needs_mask=needs_mask)

    partial_tiles = pl.pallas_call(
        kernel,
        out_shape=jax.ShapeDtypeStruct((n_grid * 8, jb * 128), jnp.float32),
        grid_spec=pltpu.PrefetchScalarGridSpec(
            num_scalar_prefetch=0,
            grid=(n_grid, jb),
            in_specs=in_specs,
            out_specs=pl.BlockSpec((8, 128), lambda i, j: (i, j)),
        ),
        compiler_params=pltpu.CompilerParams(
            dimension_semantics=("parallel", "parallel"),
            vmem_limit_bytes=_VMEM_LIMIT),
    )(xk, tk, ak)

    # Every element of each (8,128) tile equals that block's partial sum, so a
    # single contiguous reduce (divided by 1024) recovers the total loss.
    loss_sum = jnp.sum(partial_tiles) * (1.0 / 1024.0)
    return loss_sum / jnp.float32(n * hw)


def _focal_loss_ref(logits, target, gamma=0.0, alpha=None):
    x = jnp.asarray(logits)
    if x.ndim > 2:
        n, c = x.shape[0], x.shape[1]
        x = jnp.transpose(x.reshape(n, c, -1), (0, 2, 1)).reshape(-1, c)
    t = jnp.asarray(target).reshape(-1)
    logsm = jax.nn.log_softmax(x.astype(jnp.float32), axis=-1)
    logpt = jnp.take_along_axis(logsm, t[:, None], axis=1)[:, 0]
    pt = jnp.exp(logpt)
    if alpha is not None:
        a = jnp.asarray(alpha, jnp.float32).reshape(-1)
        logpt = logpt * a[t]
    loss = -1.0 * (1.0 - pt) ** gamma * logpt
    return jnp.mean(loss)


if __name__ == "__main__":
    key = jax.random.PRNGKey(0)
    k1, k2, k3, k4, k5, k6, k7, k8 = jax.random.split(key, 8)

    # Case 1: NCHW, HW % 128 == 0 (repacked path), integer gamma, per-class alpha.
    N, C, H, W = 2, 4, 16, 16
    x = jax.random.normal(k1, (N, C, H, W), jnp.float32)
    tgt = jax.random.randint(k2, (N, H, W), 0, C, jnp.int32)
    out = jax.block_until_ready(
        focal_loss(x, tgt, gamma=2.0, alpha=[0.1, 0.2, 0.3, 0.4]))
    ref = _focal_loss_ref(x, tgt, gamma=2.0, alpha=[0.1, 0.2, 0.3, 0.4])
    assert np.allclose(np.asarray(out), np.asarray(ref), rtol=1e-3, atol=1e-4), (out, ref)

    # Case 2: HW % 128 != 0 (fallback layout + partial-block mask), fractional
    # gamma (clamped pow path), alpha=None, small forced tile.
    N2, C2, H2, W2 = 2, 4, 16, 18
    x2 = jax.random.normal(k3, (N2, C2, H2, W2), jnp.float32)
    tgt2 = jax.random.randint(k4, (N2, H2, W2), 0, C2, jnp.int32)
    out2 = jax.block_until_ready(focal_loss(x2, tgt2, gamma=1.5, alpha=None, tm=128))
    ref2 = _focal_loss_ref(x2, tgt2, gamma=1.5, alpha=None)
    assert np.allclose(np.asarray(out2), np.asarray(ref2), rtol=1e-3, atol=1e-4), (out2, ref2)

    # Case 3: 2-D (rows, C) path (no transpose), scalar alpha (binary), gamma=0.
    x2d = jax.random.normal(k5, (32, 2), jnp.float32)
    tgt2d = jax.random.randint(k6, (32,), 0, 2, jnp.int32)
    out3 = jax.block_until_ready(focal_loss(x2d, tgt2d, gamma=0.0, alpha=0.25))
    ref3 = _focal_loss_ref(x2d, tgt2d, gamma=0.0, alpha=[0.25, 0.75])
    assert np.allclose(np.asarray(out3), np.asarray(ref3), rtol=1e-3, atol=1e-4), (out3, ref3)

    # Case 4: repacked path with a partial last block (G=17 groups, tile=8) and n=1.
    N4, C4, H4, W4 = 1, 4, 34, 64
    x4 = jax.random.normal(k7, (N4, C4, H4, W4), jnp.float32)
    tgt4 = jax.random.randint(k8, (N4, H4, W4), 0, C4, jnp.int32)
    out4 = jax.block_until_ready(focal_loss(x4, tgt4, gamma=2.0, alpha=None, tm=1024))
    ref4 = _focal_loss_ref(x4, tgt4, gamma=2.0, alpha=None)
    assert np.allclose(np.asarray(out4), np.asarray(ref4), rtol=1e-3, atol=1e-4), (out4, ref4)

    print("KERNEL_OK")
</pallas_src>

<mosaic_0001>
module attributes {stable_mosaic.version = 11 : i64} {
  func.func @_focal_kernel(%arg0: i32, %arg1: i32, %arg2: memref<1x4x2x128xf32, #tpu.memory_space<vmem>>, %arg3: memref<1x1x2x128xi32, #tpu.memory_space<vmem>>, %arg4: memref<4x1x1xf32, #tpu.memory_space<vmem>>, %arg5: memref<8x128xf32, #tpu.memory_space<vmem>>) attributes {dimension_semantics = [#tpu.dimension_semantics<parallel>, #tpu.dimension_semantics<parallel>], iteration_bounds = array<i64: 2, 1>, scalar_prefetch = 0 : i64, scratch_operands = 0 : i64, tpu.core_type = #tpu.core_type<tc>, window_params = [{transform_indices = @transform_0, window_bounds = array<i64: 1, 4, 2, 128>}, {transform_indices = @transform_1, window_bounds = array<i64: 1, 1, 2, 128>}, {pipeline_mode = #tpu.pipeline_mode<synchronous>, transform_indices = @transform_2, window_bounds = array<i64: 4, 1, 1>}, {transform_indices = @transform_3, window_bounds = array<i64: 8, 128>}]} {
    %c0 = arith.constant 0 : index
    %c0_0 = arith.constant 0 : index
    %c0_1 = arith.constant 0 : index
    %c0_2 = arith.constant 0 : index
    %0 = vector.load %arg2[%c0, %c0_0, %c0_1, %c0_2] : memref<1x4x2x128xf32, #tpu.memory_space<vmem>>, vector<1x4x2x128xf32>
    %1 = vector.shape_cast %0 : vector<1x4x2x128xf32> to vector<4x2x128xf32>
    %c0_3 = arith.constant 0 : index
    %c0_4 = arith.constant 0 : index
    %c0_5 = arith.constant 0 : index
    %c0_6 = arith.constant 0 : index
    %2 = vector.load %arg3[%c0_3, %c0_4, %c0_5, %c0_6] : memref<1x1x2x128xi32, #tpu.memory_space<vmem>>, vector<1x1x2x128xi32>
    %3 = vector.shape_cast %2 : vector<1x1x2x128xi32> to vector<1x2x128xi32>
    %cst = arith.constant dense<0xFF800000> : vector<2x128xf32>
    %4 = vector.multi_reduction <maximumf>, %1, %cst [0] : vector<4x2x128xf32> to vector<2x128xf32>
    %5 = vector.shape_cast %4 : vector<2x128xf32> to vector<1x2x128xf32>
    %6 = vector.broadcast %5 : vector<1x2x128xf32> to vector<4x2x128xf32>
    %7 = arith.subf %1, %6 : vector<4x2x128xf32>
    %8 = math.exp %7 : vector<4x2x128xf32>
    %cst_7 = arith.constant dense<0.000000e+00> : vector<2x128xf32>
    %9 = vector.multi_reduction <add>, %8, %cst_7 [0] : vector<4x2x128xf32> to vector<2x128xf32>
    %10 = vector.shape_cast %9 : vector<2x128xf32> to vector<1x2x128xf32>
    %11 = math.log %10 : vector<1x2x128xf32>
    %12 = tpu.iota {dimensions = array<i32: 0>} : vector<4x2x128xi32>
    %13 = vector.broadcast %3 : vector<1x2x128xi32> to vector<4x2x128xi32>
    %14 = arith.cmpi eq, %12, %13 : vector<4x2x128xi32>
    %cst_8 = arith.constant 0.000000e+00 : f32
    %15 = vector.broadcast %cst_8 : f32 to vector<4x2x128xf32>
    %16 = arith.select %14, %7, %15 : vector<4x2x128xi1>, vector<4x2x128xf32>
    %cst_9 = arith.constant dense<0.000000e+00> : vector<2x128xf32>
    %17 = vector.multi_reduction <add>, %16, %cst_9 [0] : vector<4x2x128xf32> to vector<2x128xf32>
    %18 = vector.shape_cast %17 : vector<2x128xf32> to vector<1x2x128xf32>
    %19 = arith.subf %18, %11 : vector<1x2x128xf32>
    %20 = math.exp %19 : vector<1x2x128xf32>
    %c0_10 = arith.constant 0 : index
    %c0_11 = arith.constant 0 : index
    %c0_12 = arith.constant 0 : index
    %21 = vector.load %arg4[%c0_10, %c0_11, %c0_12] : memref<4x1x1xf32, #tpu.memory_space<vmem>>, vector<4x1x1xf32>
    %cst_13 = arith.constant 0.000000e+00 : f32
    %22 = vector.shape_cast %21 : vector<4x1x1xf32> to vector<4x1x1xf32>
    %23 = vector.broadcast %22 : vector<4x1x1xf32> to vector<4x2x128xf32>
    %24 = vector.broadcast %cst_13 : f32 to vector<4x2x128xf32>
    %25 = arith.select %14, %23, %24 : vector<4x2x128xi1>, vector<4x2x128xf32>
    %cst_14 = arith.constant dense<0.000000e+00> : vector<2x128xf32>
    %26 = vector.multi_reduction <add>, %25, %cst_14 [0] : vector<4x2x128xf32> to vector<2x128xf32>
    %27 = vector.shape_cast %26 : vector<2x128xf32> to vector<1x2x128xf32>
    %28 = arith.mulf %19, %27 : vector<1x2x128xf32>
    %cst_15 = arith.constant 1.000000e+00 : f32
    %29 = vector.broadcast %cst_15 : f32 to vector<1x2x128xf32>
    %30 = arith.subf %29, %20 : vector<1x2x128xf32>
    %31 = arith.mulf %30, %30 : vector<1x2x128xf32>
    %cst_16 = arith.constant 0.000000e+00 : f32
    %32 = vector.broadcast %cst_16 : f32 to vector<1x2x128xf32>
    %33 = arith.subf %32, %31 : vector<1x2x128xf32>
    %34 = arith.mulf %33, %28 : vector<1x2x128xf32>
    %cst_17 = arith.constant 0.000000e+00 : f32
    %35 = vector.broadcast %cst_17 : f32 to vector<8x128xf32>
    %36 = vector.shape_cast %34 : vector<1x2x128xf32> to vector<1x1x2x128xf32>
    %cst_18 = arith.constant dense<0.000000e+00> : vector<1xf32>
    %37 = vector.multi_reduction <add>, %36, %cst_18 [1, 2, 3] : vector<1x1x2x128xf32> to vector<1xf32>
    %38 = vector.shape_cast %37 : vector<1xf32> to vector<1x1x1x1xf32>
    %39 = vector.extract %38[0, 0, 0, 0] : f32 from vector<1x1x1x1xf32>
    %40 = vector.broadcast %39 : f32 to vector<8x128xf32>
    %41 = arith.addf %35, %40 : vector<8x128xf32>
    %c0_19 = arith.constant 0 : index
    %c0_20 = arith.constant 0 : index
    %42 = vector.load %arg5[%c0_19, %c0_20] : memref<8x128xf32, #tpu.memory_space<vmem>>, vector<8x128xf32>
    tpu.vector_store %arg5[%c0_19, %c0_20], %41 {strides = array<i32>} : memref<8x128xf32, #tpu.memory_space<vmem>>, vector<8x128xf32>,
    return
  }
  func.func @transform_0(%arg0: i32, %arg1: i32) -> (i32, i32, i32, i32) {
    %c0_i32 = arith.constant 0 : i32
    %c0_i32_0 = arith.constant 0 : i32
    %c0_i32_1 = arith.constant 0 : i32
    return %arg0, %c0_i32, %arg1, %c0_i32_0 : i32, i32, i32, i32
  }
  func.func @transform_1(%arg0: i32, %arg1: i32) -> (i32, i32, i32, i32) {
    %c0_i32 = arith.constant 0 : i32
    %c0_i32_0 = arith.constant 0 : i32
    %c0_i32_1 = arith.constant 0 : i32
    return %arg0, %c0_i32, %arg1, %c0_i32_0 : i32, i32, i32, i32
  }
  func.func @transform_2(%arg0: i32, %arg1: i32) -> (i32, i32, i32) {
    %c0_i32 = arith.constant 0 : i32
    %c0_i32_0 = arith.constant 0 : i32
    %c0_i32_1 = arith.constant 0 : i32
    %c0_i32_2 = arith.constant 0 : i32
    return %c0_i32, %c0_i32_0, %c0_i32_1 : i32, i32, i32
  }
  func.func @transform_3(%arg0: i32, %arg1: i32) -> (i32, i32) {
    %c0_i32 = arith.constant 0 : i32
    return %arg0, %arg1 : i32, i32
  }
}

</mosaic_0001>

<bundles_post_ra>
// kernel: tpu_custom_call.1
= control target key start
LH: loop header
LB: loop body
LE: loop exit
PB: predicated region body
PF: predicated region fallthrough
CT: control target
= control target key end

     0   :  { %8 = vsyncpa [#allocation3], 0  ;;  %s862_s0 = inlined_call_operand.hbm [shape: f32[2,4,2,128], index: 0, kind: input, shape index: {}]   ;;  %s863_s1 = inlined_call_operand.vmem [shape: s32[2,1,2,128], index: 1, kind: input, shape index: {}]   ;;  %s864_s2 = inlined_call_operand.vmem [shape: f32[4,1,1], index: 2, kind: input, shape index: {}]   ;;  %s865_s3 = inlined_call_operand.hbm [shape: f32[16,128], index: 3, kind: output, shape index: {}]  }
   0x1   :  { %10 = vsyncpa [#allocation3 + $0x1], 0 }
   0x2   :  { %11 = vsyncpa [#allocation4], 0 }
   0x3   :  { %13 = vsyncpa [#allocation4 + $0x1], 0  ;;  %s696_s12 = smov 0   ;;  %s698_s13 = smov 0  }
   0x4   :  { %s700_s14 = smov 0   ;;  %s702_s15 = smov 0  }
   0x5   :  { %s704_s16 = smov 0   ;;  %s706_s17 = smov 0  }
   0x6 LB: > { %s458_s18 = sadd.s32 4294967295, %s671_s17   ;;  %s459_s19 = sadd.s32 4294967294, %s671_s17   ;;  %s671_s17 = sphi %s706_s17, %s19_s17   ;;  %s667_s16 = sphi %s704_s16, %s874_s16   ;;  %s663_s15 = sphi %s702_s15, %s873_s15   ;;  %s659_s14 = sphi %s700_s14, %s872_s14   ;;  %s655_s13 = sphi %s698_s13, %s871_s13   ;;  %s651_s12 = sphi %s696_s12, %s870_s12  }
   0x7   : > { %s31_s20 = sadd.s32 1, %s667_s16  ;;  %s40_s21 = sadd.s32 1, %s659_s14 }
   0x8   : > { %p33_p0 = scmp.ge.s32.totalorder %s31_s20, 2  ;;  %p47_p1 = scmp.ne.s32.totalorder %s659_s14, %s655_s13 }
   0x9   : > { %p48_p2 = scmp.eq.s32.totalorder %s671_s17, 0  ;;  %p53_p3 = scmp.ne.s32.totalorder %s655_s13, %s651_s12 }
   0xa   : > { %s876_s20 = smov (%p33_p0, %s31_s20), 0  ;;  %p54_p5 = scmp.eq.s32.totalorder %s458_s18, 0 }
   0xb   : > { %p737_p4 = por %p48_p2, %p47_p1  ;;  %s35_s23 = ssub.s32 %s667_s16, %s876_s20 }
   0xc   : > { %p128_p6 = scmp.eq.s32.totalorder %s458_s18, 1  ;;  %p38_p7 = scmp.eq.s32.totalorder %s35_s23, 0 }
   0xd   : > { %p743_p8 = por %p54_p5, %p53_p3  ;;  %p134_p10 = scmp.eq.s32.totalorder %s459_s19, 1 }
   0xe   : > { %p747_p9 = por %p128_p6, %p47_p1  ;;  %p461_p12 = scmp.ge.s32.totalorder %s671_s17, 2 }
   0xf   : > { %s752_s26 = scalar_select %p38_p7, %s659_s14, %s40_s21  }
  0x10   : > { %p754_p11 = por %p134_p10, %p53_p3  ;;  %p488_p13 = scmp.lt.s32.totalorder %s671_s17, 2 }
  0x11   : > { %s157_s28 = sand.u32 1, %s659_s14   ;;  %s473_s30 = sshll.u32 %s667_s16, 3 }
  0x12   : > { %s462_s29 = sshll.u32 %s157_s28, 3  ;;  %s167_s6 = scalar_lea.hbm %s862_s0, %s473_s30 }
  0x13   : > { %s161_s7 = scalar_lea.vmem [#allocation2], %s462_s29  ;;  %s168_s9 = sshll.u32 %s167_s6, 4  ;;  %s169_s9 = int_to_ptr.hbm [resolvable:$true] %s168_s9 }
  0x14   : > { %s170_s8 = sshll.u32 %s161_s7, 4  ;;  %p481_p0 = pnand %p488_p13, %p737_p4  ;;  %s171_s8 = int_to_ptr.vmem [resolvable:$true] %s170_s8 }
  0x15   : > { %p465_p1 = scmp.ge.s32.totalorder %s671_s17, 1  ;;  %s158_s10 = scalar_lea.sflag [#allocation3], %s157_s28 }
  0x16   : > { %s673_s11 = smov 32   ;;  %s674_s18 = smov 2  }
  0x17   : > { %483 = dma.hbm_to_vmem [thread:$0]  (!%p481_p0), %s169_s9, 128, %s171_s8, %s158_s10, %s673_s11, %s673_s11, %s674_s18  }
  0x18   : > { %p188_p2 = scmp.lt.s32.totalorder %s671_s17, 3 }
  0x1a   : > { %p189_p3 = pnand %p465_p1, %p188_p2 }
  0x1b   : > { %s770_s19 = sand.u32 (!%p189_p3), 1, %s655_s13  }
  0x1c   : > { %192 = sbr.rel (%p189_p3) target bundleno = 354 (0x162), region = 32  ;;  %s466_s21 = sshll.u32 (!%p189_p3), %s770_s19, 3 }
  0x1d   : > { %s195_s23 = scalar_lea.sflag (!%p189_p3), [#allocation3], %s770_s19  ;;  %s198_s22 = scalar_lea.vmem (!%p189_p3), [#allocation2], %s466_s21 }
  0x21   : > { %642 = dma.done.wait (%p743_p8), %s195_s23, 128  }
  0x22   : > { %644 = vsyncadd (%p743_p8), %s195_s23, 4294967168  ;;  %v675_v0 = vmov 0   ;;  %v543_v1 = vld [vmem:[%s864_s2 + $0x2] ss:$0 sm:$0xff]  ;;  %v544_v2 = vld [vmem:[%s864_s2] ss:$0 sm:$0xff] }
  0x23   : > { %542 = vset.pattern.permute.xlu1 %v675_v0  ;;  %541 = vset.pattern.permute.xlu0 %v675_v0  ;;  %v545_v3 = vld [vmem:[%s864_s2 + $0x3] ss:$0 sm:$0xff]  ;;  %v546_v4 = vld [vmem:[%s864_s2 + $0x1] ss:$0 sm:$0xff]  ;;  %vm241_vm0 = vcmask 1041408   ;;  %p229_p4 = scmp.lt.s32.totalorder %s663_s15, 1 }
  0x24   : > { %309 = vperm.xlu1 %542, %v543_v1   ;;  %301 = vperm.xlu0 %541, %v544_v2   ;;  %v236_v5 = vld [vmem:[%s198_s22] sm:$0x3]  ;;  %v237_v6 = vld [vmem:[%s198_s22 + $0x2] sm:$0x3]  ;;  %v238_v7 = vld [vmem:[%s198_s22 + $0x4] sm:$0x3] }
  0x25   : > { %v239_v8 = vld [vmem:[%s198_s22 + $0x6] sm:$0x3]  ;;  %v242_v9 = vsel %vm241_vm0, %v236_v5, -inf  ;;  %v243_v10 = vsel %vm241_vm0, %v237_v6, -inf  ;;  %v244_v11 = vsel %vm241_vm0, %v238_v7, -inf  ;;  %s230_s8 = scalar_select %p229_p4, %s663_s15, 1 }
  0x26   : > { %v245_v12 = vsel %vm241_vm0, %v239_v8, -inf  ;;  %v246_v13 = vmax.f32 %v242_v9, %v243_v10  ;;  %s470_s23 = sshll.u32 %s663_s15, 3  ;;  %s228_s30 = scalar_lea.vmem [#allocation5], %s466_s21 }
  0x27   : > { %v247_v14 = vmax.f32 %v244_v11, %v245_v12  ;;  %s468_s9 = sshll.u32 %s230_s8, 1  ;;  %s357_s29 = scalar_lea.hbm %s865_s3, %s470_s23 }
  0x28   : > { %s235_s18 = scalar_lea.vmem %s863_s1, %s468_s9  ;;  %s359_s4 = sshll.u32 %s228_s30, 4  ;;  %s360_s4 = int_to_ptr.vmem [resolvable:$true] %s359_s4 }
  0x29   : > { %v248_v15 = vmax.f32 %v246_v13, %v247_v14  ;;  %v240_v30 = vld [vmem:[%s235_s18] sm:$0x3]  ;;  %s361_s5 = sshll.u32 %s357_s29, 4  ;;  %s346_s7 = scalar_lea.sflag [#allocation4], %s770_s19  ;;  %s362_s5 = int_to_ptr.hbm [resolvable:$true] %s361_s5 }
  0x2a   : > { %vm270_vm1 = vcmp.eq.s32.totalorder %v240_v30, 0  ;;  %vm271_vm2 = vcmp.eq.s32.totalorder %v240_v30, 1  ;;  %vm272_vm3 = vcmp.eq.s32.totalorder %v240_v30, 2  ;;  %vm273_vm4 = vcmp.eq.s32.totalorder %v240_v30, 3  ;;  %s603_s24 = sshra.s32 %s362_s5, 4  ;;  %s609_s10 = scalar_lea.hbm %s865_s3, 16  ;;  %s604_s24 = int_to_ptr.hbm [resolvable:$true] %s603_s24 }
  0x2b   : > { %v249_v16 = vsub.f32 %v236_v5, %v248_v15  ;;  %v250_v17 = vsub.f32 %v237_v6, %v248_v15  ;;  %v251_v19 = vsub.f32 %v238_v7, %v248_v15  ;;  %v252_v22 = vsub.f32 %v239_v8, %v248_v15  ;;  %s605_s8 = scalar_lea.hbm %s604_s24, 8  ;;  %p610_p8 = scmp.lt.s32.totalorder %s604_s24, %s865_s3 }
  0x2c   : > { %313 = vperm.xlu1 %542, %v545_v3   ;;  %305 = vperm.xlu0 %541, %v546_v4   ;;  %p606_p5 = scmp.ne.s32.totalorder %s604_s24, %s605_s8  ;;  %p611_p10 = scmp.lt.s32.totalorder %s609_s10, %s605_s8 }
  0x2d   : > { %v253_v18 = vmul.f32 1.442695, %v249_v16  ;;  %v255_v20 = vmul.f32 1.442695, %v250_v17  ;;  %v257_v21 = vmul.f32 1.442695, %v251_v19 }
  0x2e   : > { %v259_v23 = vmul.f32 1.442695, %v252_v22  ;;  %v274_v35 = vsel %vm270_vm1, %v249_v16, 0.0  ;;  %v275_v36 = vsel %vm271_vm2, %v250_v17, 0.0  ;;  %v276_v40 = vsel %vm272_vm3, %v251_v19, 0.0  ;;  %p607_p6 = pnand %p606_p5, %p747_p9  ;;  %p612_p13 = por %p611_p10, %p610_p8 }
  0x2f   : > { %547 = vpow2.f32 %v253_v18  ;;  %v278_v38 = vsel %vm241_vm0, %v274_v35, 0.0  ;;  %v279_v39 = vsel %vm241_vm0, %v275_v36, 0.0  ;;  %v281_v42 = vsel %vm241_vm0, %v276_v40, 0.0 }
  0x30   : > { %549 = vpow2.f32 %v255_v20  ;;  %v280_v41 = vadd.f32 %v279_v39, %v278_v38  ;;  %v277_v43 = vsel %vm273_vm4, %v252_v22, 0.0  ;;  %p608_p7 = pneg %p607_p6 }
  0x31   : > { %551 = vpow2.f32 %v257_v21  ;;  %v283_v46 = vsel %vm241_vm0, %v277_v43, 0.0 }
  0x32   : > { %553 = vpow2.f32 %v259_v23  ;;  %v282_v44 = vadd.f32 %v281_v42, %v280_v41  ;;  %p613_p0 = pnand %p612_p13, %p608_p7 }
  0x34   : > { %v284_v48 = vadd.f32 %v283_v46, %v282_v44 }
  0x35   : > { %v548_v24 = vpop.eup %547 }
  0x36   : > { %v550_v25 = vpop.eup %549  ;;  %v261_v26 = vsel %vm241_vm0, %v548_v24, 0.0 }
  0x37   : > { %v262_v27 = vsel %vm241_vm0, %v550_v25, 0.0  ;;  %v552_v28 = vpop.eup %551 }
  0x38   : > { %v263_v29 = vadd.f32 %v262_v27, %v261_v26  ;;  %v264_v31 = vsel %vm241_vm0, %v552_v28, 0.0  ;;  %v554_v32 = vpop.eup %553 }
  0x39   : > { %v266_v34 = vsel %vm241_vm0, %v554_v32, 0.0 }
  0x3a   : > { %v265_v33 = vadd.f32 %v264_v31, %v263_v29 }
  0x3c   : > { %v267_v37 = vadd.f32 %v266_v34, %v265_v33 }
  0x3e   : > { %555 = vlog2.f32 %v267_v37 }
  0x44   : > { %v556_v45 = vpop.eup %555 }
  0x45   : > { %v269_v47 = vmul.f32 0.6931472, %v556_v45 }
  0x47   : > { %v285_v49 = vsub.f32 %v284_v48, %v269_v47 }
  0x49   : > { %v286_v50 = vmul.f32 1.442695, %v285_v49 }
  0x4b   : > { %557 = vpow2.f32 %v286_v50 }
  0x51   : > { %v558_v53 = vpop.eup %557 }
  0x52   : > { %v328_v55 = vsub.f32 1.0, %v558_v53 }
  0x54   : > { %v329_v0 = vmul.f32 %v328_v55, %v328_v55 }
  0x56   : > { %v330_v5 = vsub.f32 0.0, %v329_v0 }
  0x96   : > { %v310_v51 = vpop.permute.xlu1 %309  ;;  %v302_v52 = vpop.permute.xlu0 %301 }
  0x97   : > { %v316_v54 = vsel %vm270_vm1, %v302_v52, 0.0  ;;  %v318_v58 = vsel %vm272_vm3, %v310_v51, 0.0 }
  0x98   : > { %v320_v60 = vsel %vm241_vm0, %v316_v54, 0.0  ;;  %v323_v1 = vsel %vm241_vm0, %v318_v58, 0.0 }
  0x9e   : > { %v314_v56 = vpop.permute.xlu1 %313  ;;  %v306_v57 = vpop.permute.xlu0 %305 }
  0x9f   : > { %v317_v59 = vsel %vm271_vm2, %v306_v57, 0.0  ;;  %v319_v62 = vsel %vm273_vm4, %v314_v56, 0.0 }
  0xa0   : > { %v321_v61 = vsel %vm241_vm0, %v317_v59, 0.0  ;;  %v325_v3 = vsel %vm241_vm0, %v319_v62, 0.0 }
  0xa1   : > { %v322_v63 = vadd.f32 %v321_v61, %v320_v60 }
  0xa3   : > { %v324_v2 = vadd.f32 %v323_v1, %v322_v63 }
  0xa5   : > { %v326_v4 = vadd.f32 %v325_v3, %v324_v2 }
  0xa7   : > { %v327_v6 = vmul.f32 %v326_v4, %v285_v49 }
  0xa9   : > { %v331_v7 = vmul.f32 %v330_v5, %v327_v6 }
  0xab   : > { %v332_v8 = vsel %vm241_vm0, %v331_v7, 0.0 }
  0xac   : > { %333 = vadd.xlane.f32.xlu2 %v332_v8 }
 0x11f   : > { %v334_v9 = vpop.xlane.xlu2 %333 }
 0x120   : > { %v335_v10 = vrot.slane %v334_v9, 4 }
 0x122   : > { %v336_v11 = vadd.f32 %v335_v10, %v334_v9 }
 0x124   : > { %v337_v12 = vrot.slane %v336_v11, 2 }
 0x126   : > { %v338_v13 = vadd.f32 %v337_v12, %v336_v11 }
 0x128   : > { %v339_v14 = vrot.slane %v338_v13, 1 }
 0x12a   : > { %v340_v15 = vadd.f32 %v339_v14, %v338_v13 }
 0x12c   : > { %474 = vpush %v340_v15 }
 0x15d   : > { %s475_s6 = spop %474 }
 0x15e   : > { %v342_v16 = vstv %s475_s6 }
 0x15f   : > { %344 = vst [vmem:[%s228_s30] sm:$0xff] %v342_v16 }
 0x160   : > { %616 = shalt.err (!%p613_p0)
}
 0x161   : > { %478 = dma.vmem_to_hbm [thread:$0]  (%p747_p9), %s360_s4, 128, %s362_s5, %s346_s7  }
 0x162 PF: > { %s373_s19 = sand.u32 1, %s651_s12   ;;  %p485_p1 = pnand %p461_p12, %p754_p11 }
 0x163   : > { %s374_s18 = scalar_lea.sflag [#allocation4], %s373_s19 }
 0x164   : > { %p486_p2 = pneg %p485_p1 }
 0x166   : > { %646 = dma.done.wait (%p486_p2), %s374_s18, 128  }
 0x167   : > { %648 = vsyncadd (%p486_p2), %s374_s18, 4294967168  ;;  %s19_s17 = sadd.s32 1, %s671_s17   ;;  %s870_s12 = smov %s655_s13 }
 0x168   : > { %p16_p3 = scmp.ge.s32.totalorder %s19_s17, 4   ;;  %s871_s13 = smov %s659_s14 }
 0x169   : > { %s872_s14 = smov %s752_s26  ;;  %s873_s15 = smov %s667_s16 }
 0x16a   : > { %s874_s16 = smov %s876_s20  ;;  %18 = sbr.rel (!%p16_p3) target bundleno = 6 (0x6), region = 80 }
 0x16f   :  { %380 = vsyncpa [#allocation3], 1 }
 0x170   :  { %382 = vsyncpa [#allocation3 + $0x1], 1 }
 0x171   :  { %383 = vsyncpa [#allocation4], 1 }
 0x172   :  { %385 = vsyncpa [#allocation4 + $0x1], 1 }

</bundles_post_ra>
